<compile_context>
chip_gen: v5e
topology: v5e:2x2
jax: 0.10.0
libtpu: 0.0.40
codegen_flags: <defaults>
</compile_context>

<pallas_src>
import functools
import math

import jax
import jax.numpy as jnp
import numpy as np
from jax.experimental import pallas as pl
from jax.experimental.pallas import tpu as pltpu

# TODO(synk): torchvision RandomResizedCrop / RandomHorizontalFlip (stochastic
# host-side augmentation) have no Pallas equivalent and are skipped; only the
# deterministic Normalize part of `self.transforms` is reproduced.


def _gridmask_kernel(coords_ref, cs_ref, x_ref, o_ref, *,
                     hh, d, l, st_h, st_w, mode, scale, bias):
    """One grid step: B_TILE samples, all channels, all (flattened) pixels."""
    # Centered output-pixel coordinates (shared by all samples), VMEM-resident.
    xc = coords_ref[0:1, :]                     # (1, HW): x + off_w + 0.5 - hh/2
    yc = coords_ref[1:2, :]                     # (1, HW): y + off_h + 0.5 - hh/2

    cs = cs_ref[...]                            # (B, 2) per-sample cos/sin
    cos_a = cs[:, 0:1]                          # (B, 1)
    sin_a = cs[:, 1:2]                          # (B, 1)

    # affine_grid + grid_sample (align_corners=False) source coordinates reduce
    # to a rotation about the mask center.
    half = (hh - 1) * 0.5
    ix = cos_a * xc - sin_a * yc + half         # (B, HW)
    iy = sin_a * xc + cos_a * yc + half         # (B, HW)

    x0f = jnp.floor(ix)
    y0f = jnp.floor(iy)
    wx1 = ix - x0f
    wy1 = iy - y0f
    x0 = x0f.astype(jnp.int32)
    y0 = y0f.astype(jnp.int32)

    # Stripe phase at the lower integer neighbour; upper neighbour = phase+1
    # with wrap (avoids two more non-power-of-2 mods).
    rx0 = jnp.mod(x0 - st_w, d)
    ry0 = jnp.mod(y0 - st_h, d)
    rx1 = jnp.where(rx0 == d - 1, 0, rx0 + 1)
    ry1 = jnp.where(ry0 == d - 1, 0, ry0 + 1)

    # "Open" (mask == 1) indicators at the two integer neighbours per axis,
    # ANDed with in-bounds (zero padding outside [0, hh)).
    c0 = ((rx0 >= l) & (x0 >= 0) & (x0 < hh)).astype(jnp.float32)
    c1 = ((rx1 >= l) & (x0 >= -1) & (x0 < hh - 1)).astype(jnp.float32)
    r0 = ((ry0 >= l) & (y0 >= 0) & (y0 < hh)).astype(jnp.float32)
    r1 = ((ry1 >= l) & (y0 >= -1) & (y0 < hh - 1)).astype(jnp.float32)

    # Separable mask => bilinear interpolation factorizes into two 1-D lerps.
    fx = (1.0 - wx1) * c0 + wx1 * c1
    fy = (1.0 - wy1) * r0 + wy1 * r1
    m = fy * fx                                 # (B, HW) rotated + cropped mask
    if mode == 1:
        m = 1.0 - m

    # Normalize (folded into mul+add with compile-time constants) and apply
    # mask, one channel at a time: lane-dense, no mask broadcast/reshape.
    for ch in range(len(scale)):
        img = x_ref[:, ch, :].astype(jnp.float32)            # (B, HW)
        o_ref[:, ch, :] = ((img * scale[ch] + bias[ch]) * m).astype(o_ref.dtype)


def _pick_batch_tile(n, bytes_per_image, budget):
    """Pick samples-per-grid-step so each step moves enough bytes, while the
    cos/sin BlockSpec stays legal (tile == n, or a multiple of 8 dividing n)."""
    if n < 8 or n * bytes_per_image <= budget:
        return n
    candidates = [bt for bt in range(8, n + 1, 8) if n % bt == 0]
    fitting = [bt for bt in candidates if bt * bytes_per_image <= budget]
    if fitting:
        return max(fitting)
    if candidates:
        return min(candidates)
    return n


def gridmask_forward(images, augment_images, epoch=None, *,
                     d1=96, d2=224, rotate=360, ratio=0.6, mode=1, seed=0):
    """JAX/Pallas equivalent of GridMask.forward.

    `images` and `epoch` are unused, exactly as in the reference forward
    (set_prob updates self.prob but the mask is never gated by it).
    """
    del images, epoch
    n, c, h, w = augment_images.shape
    hh = int(math.ceil(math.sqrt(h * h + w * w)))
    hw = h * w

    # --- random stripe geometry (torch draws with .item(); here drawn from a
    #     fixed seed at trace time -- identical geometry per retrace). ---
    rng = np.random.RandomState(seed)
    d = int(rng.randint(d1, d2))
    l = int(math.ceil(d * ratio))
    st_h = int(rng.randint(0, d))
    st_w = int(rng.randint(0, d))

    # Per-sample rotation angles (degrees), as in the reference.
    key = jax.random.PRNGKey(seed)
    if rotate > 0:
        angle = jax.random.randint(key, (n,), 0, rotate).astype(jnp.float32)
    else:
        angle = jnp.zeros((n,), jnp.float32)     # identity rotation == no rotation
    rad = angle * (math.pi / 180.0)
    cos_sin = jnp.stack([jnp.cos(rad), jnp.sin(rad)], axis=1)       # (n, 2) f32

    # Normalize constants folded to scale/bias (compile-time Python floats).
    mean = (0.4914, 0.4822, 0.4465)
    std = (0.2023, 0.1994, 0.2010)
    scale = tuple(1.0 / std[i % 3] for i in range(c))
    bias = tuple(-mean[i % 3] / std[i % 3] for i in range(c))

    # Precomputed centered pixel coordinates, (2, HW) f32, resident in VMEM.
    off_h = (hh - h) // 2
    off_w = (hh - w) // 2
    jj = jnp.arange(hw, dtype=jnp.int32)
    coords = jnp.stack([
        (jj % w).astype(jnp.float32) + (off_w + 0.5 - hh / 2.0),
        (jj // w).astype(jnp.float32) + (off_h + 0.5 - hh / 2.0),
    ], axis=0)

    # Keep native dtype end-to-end; the reshape to a lane-dense flattened
    # pixel axis is a metadata-only change for contiguous NCHW.
    x_flat = augment_images.reshape(n, c, hw)
    out_dtype = augment_images.dtype  # matches torch's final .to(target_dtype)

    itemsize = int(np.dtype(augment_images.dtype).itemsize)
    # rough per-sample VMEM footprint: in + out tiles plus ~10 f32 temporaries
    bytes_per_image = c * hw * 2 * itemsize + hw * 4 * 10
    b_tile = _pick_batch_tile(n, bytes_per_image, budget=6 * 1024 * 1024)
    assert n % b_tile == 0

    kernel = functools.partial(
        _gridmask_kernel,
        hh=hh, d=d, l=l, st_h=st_h, st_w=st_w,
        mode=mode, scale=scale, bias=bias)

    out = pl.pallas_call(
        kernel,
        out_shape=jax.ShapeDtypeStruct((n, c, hw), out_dtype),
        grid=(n // b_tile,),
        in_specs=[
            pl.BlockSpec((2, hw), lambda b: (0, 0)),             # coord table (resident)
            pl.BlockSpec((b_tile, 2), lambda b: (b, 0)),         # per-sample cos/sin
            pl.BlockSpec((b_tile, c, hw), lambda b: (b, 0, 0)),  # image tile (native dtype)
        ],
        out_specs=pl.BlockSpec((b_tile, c, hw), lambda b: (b, 0, 0)),
        compiler_params=pltpu.CompilerParams(
            dimension_semantics=("parallel",),
            vmem_limit_bytes=32 * 1024 * 1024),
    )(coords, cos_sin, x_flat)

    return out.reshape(n, c, h, w)


if __name__ == "__main__":
    key = jax.random.PRNGKey(0)
    k1, k2 = jax.random.split(key)
    images = jax.random.normal(k1, (2, 3, 16, 16), jnp.float32)        # unused by forward
    augment_images = jax.random.uniform(k2, (2, 3, 16, 16), jnp.float32)

    out = gridmask_forward(images, augment_images, epoch=10)
    out = jax.block_until_ready(out)

    assert out.shape == augment_images.shape
    assert out.dtype == augment_images.dtype
    assert bool(jnp.all(jnp.isfinite(out)))
    print("KERNEL_OK")
</pallas_src>

<mosaic_0001>
module attributes {stable_mosaic.version = 11 : i64} {
  func.func @_gridmask_kernel(%arg0: i32, %arg1: memref<2x256xf32, #tpu.memory_space<vmem>>, %arg2: memref<2x2xf32, #tpu.memory_space<vmem>>, %arg3: memref<2x3x256xf32, #tpu.memory_space<vmem>>, %arg4: memref<2x3x256xf32, #tpu.memory_space<vmem>>) attributes {dimension_semantics = [#tpu.dimension_semantics<parallel>], iteration_bounds = array<i64: 1>, scalar_prefetch = 0 : i64, scratch_operands = 0 : i64, tpu.core_type = #tpu.core_type<tc>, window_params = [{pipeline_mode = #tpu.pipeline_mode<synchronous>, transform_indices = @transform_0, window_bounds = array<i64: 2, 256>}, {transform_indices = @transform_1, window_bounds = array<i64: 2, 2>}, {transform_indices = @transform_2, window_bounds = array<i64: 2, 3, 256>}, {transform_indices = @transform_3, window_bounds = array<i64: 2, 3, 256>}]} {
    %c0 = arith.constant 0 : index
    %c0_0 = arith.constant 0 : index
    %0 = vector.load %arg1[%c0, %c0_0] : memref<2x256xf32, #tpu.memory_space<vmem>>, vector<1x256xf32>
    %c1 = arith.constant 1 : index
    %c0_1 = arith.constant 0 : index
    %1 = vector.load %arg1[%c1, %c0_1] : memref<2x256xf32, #tpu.memory_space<vmem>>, vector<1x256xf32>
    %c0_2 = arith.constant 0 : index
    %c0_3 = arith.constant 0 : index
    %2 = vector.load %arg2[%c0_2, %c0_3] : memref<2x2xf32, #tpu.memory_space<vmem>>, vector<2x2xf32>
    %3 = vector.extract_strided_slice %2 {offsets = [0, 0], sizes = [2, 1], strides = [1, 1]} : vector<2x2xf32> to vector<2x1xf32>
    %4 = vector.extract_strided_slice %2 {offsets = [0, 1], sizes = [2, 1], strides = [1, 1]} : vector<2x2xf32> to vector<2x1xf32>
    %5 = vector.broadcast %3 : vector<2x1xf32> to vector<2x256xf32>
    %6 = vector.broadcast %0 : vector<1x256xf32> to vector<2x256xf32>
    %7 = arith.mulf %5, %6 : vector<2x256xf32>
    %8 = vector.broadcast %4 : vector<2x1xf32> to vector<2x256xf32>
    %9 = vector.broadcast %1 : vector<1x256xf32> to vector<2x256xf32>
    %10 = arith.mulf %8, %9 : vector<2x256xf32>
    %11 = arith.subf %7, %10 : vector<2x256xf32>
    %cst = arith.constant 1.100000e+01 : f32
    %12 = vector.broadcast %cst : f32 to vector<2x256xf32>
    %13 = arith.addf %11, %12 : vector<2x256xf32>
    %14 = vector.broadcast %4 : vector<2x1xf32> to vector<2x256xf32>
    %15 = vector.broadcast %0 : vector<1x256xf32> to vector<2x256xf32>
    %16 = arith.mulf %14, %15 : vector<2x256xf32>
    %17 = vector.broadcast %3 : vector<2x1xf32> to vector<2x256xf32>
    %18 = vector.broadcast %1 : vector<1x256xf32> to vector<2x256xf32>
    %19 = arith.mulf %17, %18 : vector<2x256xf32>
    %20 = arith.addf %16, %19 : vector<2x256xf32>
    %cst_4 = arith.constant 1.100000e+01 : f32
    %21 = vector.broadcast %cst_4 : f32 to vector<2x256xf32>
    %22 = arith.addf %20, %21 : vector<2x256xf32>
    %23 = math.floor %13 : vector<2x256xf32>
    %24 = math.floor %22 : vector<2x256xf32>
    %25 = arith.subf %13, %23 : vector<2x256xf32>
    %26 = arith.subf %22, %24 : vector<2x256xf32>
    %27 = arith.fptosi %23 : vector<2x256xf32> to vector<2x256xi32>
    %28 = arith.fptosi %24 : vector<2x256xf32> to vector<2x256xi32>
    %c117_i32 = arith.constant 117 : i32
    %29 = vector.broadcast %c117_i32 : i32 to vector<2x256xi32>
    %30 = arith.subi %27, %29 : vector<2x256xi32>
    %c140_i32 = arith.constant 140 : i32
    %c0_i32 = arith.constant 0 : i32
    %31 = arith.cmpi eq, %c140_i32, %c0_i32 : i32
    %c1_i32 = arith.constant 1 : i32
    %32 = arith.select %31, %c1_i32, %c140_i32 : i32
    %33 = vector.broadcast %32 : i32 to vector<2x256xi32>
    %34 = arith.remsi %30, %33 : vector<2x256xi32>
    %c0_i32_5 = arith.constant 0 : i32
    %35 = vector.broadcast %c0_i32_5 : i32 to vector<2x256xi32>
    %36 = arith.cmpi ne, %34, %35 : vector<2x256xi32>
    %c0_i32_6 = arith.constant 0 : i32
    %37 = vector.broadcast %c0_i32_6 : i32 to vector<2x256xi32>
    %38 = arith.cmpi slt, %34, %37 : vector<2x256xi32>
    %c0_i32_7 = arith.constant 0 : i32
    %39 = arith.cmpi slt, %32, %c0_i32_7 : i32
    %40 = vector.broadcast %39 : i1 to vector<2x256xi1>
    %41 = vector.broadcast %40 : vector<2x256xi1> to vector<2x256xi1>
    %42 = arith.xori %38, %41 : vector<2x256xi1>
    %43 = arith.andi %42, %36 : vector<2x256xi1>
    %44 = vector.broadcast %32 : i32 to vector<2x256xi32>
    %45 = arith.addi %34, %44 : vector<2x256xi32>
    %46 = arith.select %43, %45, %34 : vector<2x256xi1>, vector<2x256xi32>
    %c47_i32 = arith.constant 47 : i32
    %47 = vector.broadcast %c47_i32 : i32 to vector<2x256xi32>
    %48 = arith.subi %28, %47 : vector<2x256xi32>
    %c140_i32_8 = arith.constant 140 : i32
    %c0_i32_9 = arith.constant 0 : i32
    %49 = arith.cmpi eq, %c140_i32_8, %c0_i32_9 : i32
    %c1_i32_10 = arith.constant 1 : i32
    %50 = arith.select %49, %c1_i32_10, %c140_i32_8 : i32
    %51 = vector.broadcast %50 : i32 to vector<2x256xi32>
    %52 = arith.remsi %48, %51 : vector<2x256xi32>
    %c0_i32_11 = arith.constant 0 : i32
    %53 = vector.broadcast %c0_i32_11 : i32 to vector<2x256xi32>
    %54 = arith.cmpi ne, %52, %53 : vector<2x256xi32>
    %c0_i32_12 = arith.constant 0 : i32
    %55 = vector.broadcast %c0_i32_12 : i32 to vector<2x256xi32>
    %56 = arith.cmpi slt, %52, %55 : vector<2x256xi32>
    %c0_i32_13 = arith.constant 0 : i32
    %57 = arith.cmpi slt, %50, %c0_i32_13 : i32
    %58 = vector.broadcast %57 : i1 to vector<2x256xi1>
    %59 = vector.broadcast %58 : vector<2x256xi1> to vector<2x256xi1>
    %60 = arith.xori %56, %59 : vector<2x256xi1>
    %61 = arith.andi %60, %54 : vector<2x256xi1>
    %62 = vector.broadcast %50 : i32 to vector<2x256xi32>
    %63 = arith.addi %52, %62 : vector<2x256xi32>
    %64 = arith.select %61, %63, %52 : vector<2x256xi1>, vector<2x256xi32>
    %c139_i32 = arith.constant 139 : i32
    %65 = vector.broadcast %c139_i32 : i32 to vector<2x256xi32>
    %66 = arith.cmpi eq, %46, %65 : vector<2x256xi32>
    %c1_i32_14 = arith.constant 1 : i32
    %67 = vector.broadcast %c1_i32_14 : i32 to vector<2x256xi32>
    %68 = arith.addi %46, %67 : vector<2x256xi32>
    %c0_i32_15 = arith.constant 0 : i32
    %69 = vector.broadcast %c0_i32_15 : i32 to vector<2x256xi32>
    %70 = arith.select %66, %69, %68 : vector<2x256xi1>, vector<2x256xi32>
    %c139_i32_16 = arith.constant 139 : i32
    %71 = vector.broadcast %c139_i32_16 : i32 to vector<2x256xi32>
    %72 = arith.cmpi eq, %64, %71 : vector<2x256xi32>
    %c1_i32_17 = arith.constant 1 : i32
    %73 = vector.broadcast %c1_i32_17 : i32 to vector<2x256xi32>
    %74 = arith.addi %64, %73 : vector<2x256xi32>
    %c0_i32_18 = arith.constant 0 : i32
    %75 = vector.broadcast %c0_i32_18 : i32 to vector<2x256xi32>
    %76 = arith.select %72, %75, %74 : vector<2x256xi1>, vector<2x256xi32>
    %c84_i32 = arith.constant 84 : i32
    %77 = vector.broadcast %c84_i32 : i32 to vector<2x256xi32>
    %78 = arith.cmpi sge, %46, %77 : vector<2x256xi32>
    %c0_i32_19 = arith.constant 0 : i32
    %79 = vector.broadcast %c0_i32_19 : i32 to vector<2x256xi32>
    %80 = arith.cmpi sge, %27, %79 : vector<2x256xi32>
    %81 = arith.andi %78, %80 : vector<2x256xi1>
    %c23_i32 = arith.constant 23 : i32
    %82 = vector.broadcast %c23_i32 : i32 to vector<2x256xi32>
    %83 = arith.cmpi slt, %27, %82 : vector<2x256xi32>
    %84 = arith.andi %81, %83 : vector<2x256xi1>
    %85 = arith.extui %84 : vector<2x256xi1> to vector<2x256xi32>
    %86 = arith.sitofp %85 : vector<2x256xi32> to vector<2x256xf32>
    %c84_i32_20 = arith.constant 84 : i32
    %87 = vector.broadcast %c84_i32_20 : i32 to vector<2x256xi32>
    %88 = arith.cmpi sge, %70, %87 : vector<2x256xi32>
    %c-1_i32 = arith.constant -1 : i32
    %89 = vector.broadcast %c-1_i32 : i32 to vector<2x256xi32>
    %90 = arith.cmpi sge, %27, %89 : vector<2x256xi32>
    %91 = arith.andi %88, %90 : vector<2x256xi1>
    %c22_i32 = arith.constant 22 : i32
    %92 = vector.broadcast %c22_i32 : i32 to vector<2x256xi32>
    %93 = arith.cmpi slt, %27, %92 : vector<2x256xi32>
    %94 = arith.andi %91, %93 : vector<2x256xi1>
    %95 = arith.extui %94 : vector<2x256xi1> to vector<2x256xi32>
    %96 = arith.sitofp %95 : vector<2x256xi32> to vector<2x256xf32>
    %c84_i32_21 = arith.constant 84 : i32
    %97 = vector.broadcast %c84_i32_21 : i32 to vector<2x256xi32>
    %98 = arith.cmpi sge, %64, %97 : vector<2x256xi32>
    %c0_i32_22 = arith.constant 0 : i32
    %99 = vector.broadcast %c0_i32_22 : i32 to vector<2x256xi32>
    %100 = arith.cmpi sge, %28, %99 : vector<2x256xi32>
    %101 = arith.andi %98, %100 : vector<2x256xi1>
    %c23_i32_23 = arith.constant 23 : i32
    %102 = vector.broadcast %c23_i32_23 : i32 to vector<2x256xi32>
    %103 = arith.cmpi slt, %28, %102 : vector<2x256xi32>
    %104 = arith.andi %101, %103 : vector<2x256xi1>
    %105 = arith.extui %104 : vector<2x256xi1> to vector<2x256xi32>
    %106 = arith.sitofp %105 : vector<2x256xi32> to vector<2x256xf32>
    %c84_i32_24 = arith.constant 84 : i32
    %107 = vector.broadcast %c84_i32_24 : i32 to vector<2x256xi32>
    %108 = arith.cmpi sge, %76, %107 : vector<2x256xi32>
    %c-1_i32_25 = arith.constant -1 : i32
    %109 = vector.broadcast %c-1_i32_25 : i32 to vector<2x256xi32>
    %110 = arith.cmpi sge, %28, %109 : vector<2x256xi32>
    %111 = arith.andi %108, %110 : vector<2x256xi1>
    %c22_i32_26 = arith.constant 22 : i32
    %112 = vector.broadcast %c22_i32_26 : i32 to vector<2x256xi32>
    %113 = arith.cmpi slt, %28, %112 : vector<2x256xi32>
    %114 = arith.andi %111, %113 : vector<2x256xi1>
    %115 = arith.extui %114 : vector<2x256xi1> to vector<2x256xi32>
    %116 = arith.sitofp %115 : vector<2x256xi32> to vector<2x256xf32>
    %cst_27 = arith.constant 1.000000e+00 : f32
    %117 = vector.broadcast %cst_27 : f32 to vector<2x256xf32>
    %118 = arith.subf %117, %25 : vector<2x256xf32>
    %119 = arith.mulf %118, %86 : vector<2x256xf32>
    %120 = arith.mulf %25, %96 : vector<2x256xf32>
    %121 = arith.addf %119, %120 : vector<2x256xf32>
    %cst_28 = arith.constant 1.000000e+00 : f32
    %122 = vector.broadcast %cst_28 : f32 to vector<2x256xf32>
    %123 = arith.subf %122, %26 : vector<2x256xf32>
    %124 = arith.mulf %123, %106 : vector<2x256xf32>
    %125 = arith.mulf %26, %116 : vector<2x256xf32>
    %126 = arith.addf %124, %125 : vector<2x256xf32>
    %127 = arith.mulf %126, %121 : vector<2x256xf32>
    %cst_29 = arith.constant 1.000000e+00 : f32
    %128 = vector.broadcast %cst_29 : f32 to vector<2x256xf32>
    %129 = arith.subf %128, %127 : vector<2x256xf32>
    %c0_30 = arith.constant 0 : index
    %c0_31 = arith.constant 0 : index
    %c0_32 = arith.constant 0 : index
    %130 = vector.load %arg3[%c0_30, %c0_31, %c0_32] : memref<2x3x256xf32, #tpu.memory_space<vmem>>, vector<2x1x256xf32>
    %131 = vector.shape_cast %130 : vector<2x1x256xf32> to vector<2x256xf32>
    %cst_33 = arith.constant 4.94315386 : f32
    %132 = vector.broadcast %cst_33 : f32 to vector<2x256xf32>
    %133 = arith.mulf %131, %132 : vector<2x256xf32>
    %cst_34 = arith.constant -2.4290657 : f32
    %134 = vector.broadcast %cst_34 : f32 to vector<2x256xf32>
    %135 = arith.addf %133, %134 : vector<2x256xf32>
    %136 = arith.mulf %135, %129 : vector<2x256xf32>
    %c0_35 = arith.constant 0 : index
    %c0_36 = arith.constant 0 : index
    %c0_37 = arith.constant 0 : index
    %137 = vector.load %arg4[%c0_35, %c0_36, %c0_37] : memref<2x3x256xf32, #tpu.memory_space<vmem>>, vector<2x1x256xf32>
    %138 = vector.shape_cast %137 : vector<2x1x256xf32> to vector<2x256xf32>
    %139 = vector.shape_cast %136 : vector<2x256xf32> to vector<2x1x256xf32>
    tpu.vector_store %arg4[%c0_35, %c0_36, %c0_37], %139 {strides = array<i32>} : memref<2x3x256xf32, #tpu.memory_space<vmem>>, vector<2x1x256xf32>,
    %c0_38 = arith.constant 0 : index
    %c1_39 = arith.constant 1 : index
    %c0_40 = arith.constant 0 : index
    %140 = vector.load %arg3[%c0_38, %c1_39, %c0_40] : memref<2x3x256xf32, #tpu.memory_space<vmem>>, vector<2x1x256xf32>
    %141 = vector.shape_cast %140 : vector<2x1x256xf32> to vector<2x256xf32>
    %cst_41 = arith.constant 5.01504517 : f32
    %142 = vector.broadcast %cst_41 : f32 to vector<2x256xf32>
    %143 = arith.mulf %141, %142 : vector<2x256xf32>
    %cst_42 = arith.constant -2.41825485 : f32
    %144 = vector.broadcast %cst_42 : f32 to vector<2x256xf32>
    %145 = arith.addf %143, %144 : vector<2x256xf32>
    %146 = arith.mulf %145, %129 : vector<2x256xf32>
    %c0_43 = arith.constant 0 : index
    %c1_44 = arith.constant 1 : index
    %c0_45 = arith.constant 0 : index
    %147 = vector.load %arg4[%c0_43, %c1_44, %c0_45] : memref<2x3x256xf32, #tpu.memory_space<vmem>>, vector<2x1x256xf32>
    %148 = vector.shape_cast %147 : vector<2x1x256xf32> to vector<2x256xf32>
    %149 = vector.shape_cast %146 : vector<2x256xf32> to vector<2x1x256xf32>
    tpu.vector_store %arg4[%c0_43, %c1_44, %c0_45], %149 {strides = array<i32>} : memref<2x3x256xf32, #tpu.memory_space<vmem>>, vector<2x1x256xf32>,
    %c0_46 = arith.constant 0 : index
    %c2 = arith.constant 2 : index
    %c0_47 = arith.constant 0 : index
    %150 = vector.load %arg3[%c0_46, %c2, %c0_47] : memref<2x3x256xf32, #tpu.memory_space<vmem>>, vector<2x1x256xf32>
    %151 = vector.shape_cast %150 : vector<2x1x256xf32> to vector<2x256xf32>
    %cst_48 = arith.constant 4.97512436 : f32
    %152 = vector.broadcast %cst_48 : f32 to vector<2x256xf32>
    %153 = arith.mulf %151, %152 : vector<2x256xf32>
    %cst_49 = arith.constant -2.22139311 : f32
    %154 = vector.broadcast %cst_49 : f32 to vector<2x256xf32>
    %155 = arith.addf %153, %154 : vector<2x256xf32>
    %156 = arith.mulf %155, %129 : vector<2x256xf32>
    %c0_50 = arith.constant 0 : index
    %c2_51 = arith.constant 2 : index
    %c0_52 = arith.constant 0 : index
    %157 = vector.load %arg4[%c0_50, %c2_51, %c0_52] : memref<2x3x256xf32, #tpu.memory_space<vmem>>, vector<2x1x256xf32>
    %158 = vector.shape_cast %157 : vector<2x1x256xf32> to vector<2x256xf32>
    %159 = vector.shape_cast %156 : vector<2x256xf32> to vector<2x1x256xf32>
    tpu.vector_store %arg4[%c0_50, %c2_51, %c0_52], %159 {strides = array<i32>} : memref<2x3x256xf32, #tpu.memory_space<vmem>>, vector<2x1x256xf32>,
    return
  }
  func.func @transform_0(%arg0: i32) -> (i32, i32) {
    %c0_i32 = arith.constant 0 : i32
    %c0_i32_0 = arith.constant 0 : i32
    %c0_i32_1 = arith.constant 0 : i32
    return %c0_i32, %c0_i32_0 : i32, i32
  }
  func.func @transform_1(%arg0: i32) -> (i32, i32) {
    %c0_i32 = arith.constant 0 : i32
    %c0_i32_0 = arith.constant 0 : i32
    return %arg0, %c0_i32 : i32, i32
  }
  func.func @transform_2(%arg0: i32) -> (i32, i32, i32) {
    %c0_i32 = arith.constant 0 : i32
    %c0_i32_0 = arith.constant 0 : i32
    %c0_i32_1 = arith.constant 0 : i32
    return %arg0, %c0_i32, %c0_i32_0 : i32, i32, i32
  }
  func.func @transform_3(%arg0: i32) -> (i32, i32, i32) {
    %c0_i32 = arith.constant 0 : i32
    %c0_i32_0 = arith.constant 0 : i32
    %c0_i32_1 = arith.constant 0 : i32
    return %arg0, %c0_i32, %c0_i32_0 : i32, i32, i32
  }
}

</mosaic_0001>

<bundles_post_ra>
// kernel: tpu_custom_call.1
= control target key start
LH: loop header
LB: loop body
LE: loop exit
PB: predicated region body
PF: predicated region fallthrough
CT: control target
= control target key end

     0   :  { %v399_v0 = vmov 0   ;;  %v400_v2 = vmov 1   ;;  %s642_s1 = inlined_call_operand.vmem [shape: f32[2,2], index: 1, kind: input, shape index: {}]   ;;  %s643_s0 = inlined_call_operand.vmem [shape: f32[2,256], index: 0, kind: input, shape index: {}]   ;;  %s644_s2 = inlined_call_operand.vmem [shape: f32[2,3,256], index: 2, kind: input, shape index: {}]   ;;  %s645_s3 = inlined_call_operand.vmem [shape: f32[2,3,256], index: 3, kind: output, shape index: {}]  }
   0x1   :  { %397 = vset.pattern.permute.xlu0 %v399_v0  ;;  %v17_v1 = vld [vmem:[%s642_s1] sm:$0x3] }
   0x2   :  { %20 = vperm.xlu0 %397, %v17_v1   ;;  %v14_v4 = vld [vmem:[%s643_s0] ss:$2 sm:$0x3]  ;;  %v363_v5 = vld [vmem:[%s643_s0 + $0x1] ss:$2 sm:$0x3] }
   0x3   :  { %v24_v6 = vperm.slane %v14_v4, 0  ;;  %v25_v7 = vperm.slane %v14_v4, 1  ;;  %v35_v8 = vperm.slane %v363_v5, 0  ;;  %v36_v9 = vperm.slane %v363_v5, 1 }
   0xa   :  { %398 = vset.pattern.permute.xlu0 %v400_v2 }
   0xb   :  { %31 = vperm.xlu0 %398, %v17_v1  }
  0x74   :  { %v21_v3 = vpop.permute.xlu0 %20 }
  0x75   :  { %v28_v11 = vmul.f32 %v24_v6, %v21_v3  ;;  %v29_v12 = vmul.f32 %v25_v7, %v21_v3  ;;  %v47_v13 = vmul.f32 %v35_v8, %v21_v3  ;;  %v48_v14 = vmul.f32 %v36_v9, %v21_v3 }
  0x7d   :  { %v32_v10 = vpop.permute.xlu0 %31 }
  0x7e   :  { %v39_v15 = vmul.f32 %v35_v8, %v32_v10  ;;  %v40_v16 = vmul.f32 %v36_v9, %v32_v10  ;;  %v45_v17 = vmul.f32 %v32_v10, %v24_v6  ;;  %v46_v18 = vmul.f32 %v32_v10, %v25_v7 }
  0x80   :  { %v41_v19 = vsub.f32 %v28_v11, %v39_v15  ;;  %v42_v20 = vsub.f32 %v29_v12, %v40_v16  ;;  %v49_v21 = vadd.f32 %v47_v13, %v45_v17  ;;  %v50_v22 = vadd.f32 %v48_v14, %v46_v18 }
  0x82   :  { %v432_v23 = vadd.f32 11.0, %v41_v19  ;;  %v434_v24 = vadd.f32 11.0, %v42_v20  ;;  %v436_v25 = vadd.f32 11.0, %v49_v21  ;;  %v438_v26 = vadd.f32 11.0, %v50_v22 }
  0x84   :  { %v53_v27 = vfloor.f32 %v432_v23  ;;  %v54_v28 = vfloor.f32 %v434_v24  ;;  %v55_v29 = vfloor.f32 %v436_v25  ;;  %v56_v30 = vfloor.f32 %v438_v26 }
  0x86   :  { %v446_v31 = vcvt.f32.s32 %v53_v27  ;;  %v450_v32 = vcvt.f32.s32 %v54_v28  ;;  %v454_v33 = vcvt.f32.s32 %v55_v29  ;;  %v458_v34 = vcvt.f32.s32 %v56_v30 }
  0x88   :  { %v461_v35 = vadd.s32 4294967179, %v446_v31  ;;  %v464_v36 = vadd.s32 4294967179, %v450_v32  ;;  %v467_v37 = vadd.s32 4294967249, %v454_v33  ;;  %v470_v38 = vadd.s32 4294967249, %v458_v34 }
  0x8a   :  { %vm67_vm0 = vcmp.lt.s32.totalorder %v461_v35, 0  ;;  %v68_v39 = vsub.s32 0, %v461_v35  ;;  %vm99_vm1 = vcmp.lt.s32.totalorder %v464_v36, 0  ;;  %v100_v40 = vsub.s32 0, %v464_v36 }
  0x8b   :  { %vm143_vm2 = vcmp.lt.s32.totalorder %v467_v37, 0  ;;  %v144_v41 = vsub.s32 0, %v467_v37  ;;  %vm646_vm3 = vcmp.lt.s32.totalorder %v470_v38, 0  ;;  %v176_v44 = vsub.s32 0, %v470_v38 }
  0x8c   :  { %v481_v42 = vsel %vm67_vm0, %v68_v39, %v461_v35  ;;  %v486_v43 = vsel %vm99_vm1, %v100_v40, %v464_v36 }
  0x8d   :  { %v70_v45 = vand.u32 65535, %v481_v42  ;;  %v71_v46 = vshrl.u32 %v481_v42, 16  ;;  %v102_v47 = vand.u32 65535, %v486_v43  ;;  %v103_v48 = vshrl.u32 %v486_v43, 16 }
  0x8e   :  { %v497_v51 = vsel %vm143_vm2, %v144_v41, %v467_v37  ;;  %v502_v55 = vsel %vm646_vm3, %v176_v44, %v470_v38  ;;  %vm249_vm3 = vcmp.lt.s32.totalorder %v446_v31, 22 }
  0x8f   :  { %v74_v49 = vmul.u32 59918, %v70_v45  ;;  %v75_v50 = vmul.u32 41194, %v71_v46  ;;  %v73_v52 = vmul.u32 41194, %v70_v45  ;;  %v106_v53 = vmul.u32 59918, %v102_v47 }
  0x90   :  { %v107_v54 = vmul.u32 41194, %v103_v48  ;;  %v76_v56 = vmul.u32 59918, %v71_v46  ;;  %v105_v58 = vmul.u32 41194, %v102_v47  ;;  %v108_v59 = vmul.u32 59918, %v103_v48 }
  0x91   :  { %v77_v57 = vshll.u32 %v74_v49, 16  ;;  %v78_v60 = vshrl.u32 %v74_v49, 16  ;;  %v79_v61 = vshll.u32 %v75_v50, 16  ;;  %v80_v62 = vshrl.u32 %v75_v50, 16 }
  0x92   :  { %v109_v63 = vshll.u32 %v106_v53, 16  ;;  %v111_v2 = vshll.u32 %v107_v54, 16  ;;  %v146_v3 = vand.u32 65535, %v497_v51  ;;  %v147_v6 = vshrl.u32 %v497_v51, 16 }
  0x93   :  { %vm81_vm4 = vc.u32 %v73_v52, %v77_v57  ;;  %v83_v1 = vadd.s32 %v77_v57, %v73_v52  ;;  %v110_v14 = vshrl.u32 %v106_v53, 16  ;;  %v178_v18 = vand.u32 65535, %v502_v55 }
  0x94   :  { %v82_v4 = vsel %vm81_vm4, 1, %v399_v0  ;;  %vm113_vm5 = vc.u32 %v105_v58, %v109_v63  ;;  %v115_v5 = vadd.s32 %v109_v63, %v105_v58  ;;  %v150_v17 = vmul.u32 59918, %v146_v3 }
  0x95   :  { %v84_v7 = vadd.s32 %v82_v4, %v76_v56  ;;  %vm85_vm6 = vc.u32 %v83_v1, %v79_v61  ;;  %v87_v8 = vadd.s32 %v83_v1, %v79_v61  ;;  %v114_v9 = vsel %vm113_vm5, 1, %v399_v0 }
  0x96   :  { %v86_v10 = vsel %vm85_vm6, 1, %v399_v0  ;;  %v116_v11 = vadd.s32 %v114_v9, %v108_v59  ;;  %vm117_vm7 = vc.u32 %v115_v5, %v111_v2  ;;  %v119_v12 = vadd.s32 %v115_v5, %v111_v2 }
  0x97   :  { %v88_v13 = vadd.s32 %v86_v10, %v84_v7  ;;  %vm91_vm8 = vc.u32 %v87_v8, 3926827242  ;;  %v118_v15 = vsel %vm117_vm7, 1, %v399_v0  ;;  %v112_v20 = vshrl.u32 %v107_v54, 16 }
  0x98   :  { %v120_v16 = vadd.s32 %v118_v15, %v116_v11  ;;  %vm123_vm9 = vc.u32 %v119_v12, 3926827242  ;;  %v149_v21 = vmul.u32 41194, %v146_v3  ;;  %v151_v22 = vmul.u32 41194, %v147_v6 }
  0x99   :  { %v89_v19 = vadd.s32 %v88_v13, %v78_v60  ;;  %v92_v39 = vsel %vm91_vm8, 1, %v399_v0  ;;  %v153_v41 = vshll.u32 %v150_v17, 16  ;;  %v179_v44 = vshrl.u32 %v502_v55, 16 }
  0x9a   :  { %v121_v40 = vadd.s32 %v120_v16, %v110_v14  ;;  %v124_v46 = vsel %vm123_vm9, 1, %v399_v0  ;;  %v152_v47 = vmul.u32 59918, %v147_v6  ;;  %v155_v48 = vshll.u32 %v151_v22, 16 }
  0x9b   :  { %v90_v45 = vadd.s32 %v89_v19, %v80_v62  ;;  %vm157_vm10 = vc.u32 %v149_v21, %v153_v41  ;;  %v159_v50 = vadd.s32 %v153_v41, %v149_v21  ;;  %v182_v52 = vmul.u32 59918, %v178_v18 }
  0x9c   :  { %v122_v49 = vadd.s32 %v121_v40, %v112_v20  ;;  %v154_v56 = vshrl.u32 %v150_v17, 16  ;;  %v158_v54 = vsel %vm157_vm10, 1, %v399_v0  ;;  %v183_v57 = vmul.u32 41194, %v179_v44 }
  0x9d   :  { %v93_v53 = vadd.s32 %v92_v39, %v90_v45  ;;  %v160_v59 = vadd.s32 %v158_v54, %v152_v47  ;;  %vm161_vm11 = vc.u32 %v159_v50, %v155_v48  ;;  %v163_v60 = vadd.s32 %v159_v50, %v155_v48 }
  0x9e   :  { %v125_v58 = vadd.s32 %v124_v46, %v122_v49  ;;  %v162_v62 = vsel %vm161_vm11, 1, %v399_v0  ;;  %v181_v63 = vmul.u32 41194, %v178_v18  ;;  %v185_v1 = vshll.u32 %v182_v52, 16 }
  0x9f   :  { %v94_v61 = vshrl.u32 %v93_v53, 7  ;;  %v156_v3 = vshrl.u32 %v151_v22, 16  ;;  %v164_v4 = vadd.s32 %v162_v62, %v160_v59  ;;  %v184_v5 = vmul.u32 59918, %v179_v44 }
  0xa0   :  { %v126_v2 = vshrl.u32 %v125_v58, 7  ;;  %vm167_vm12 = vc.u32 %v163_v60, 3926827242  ;;  %v187_v7 = vshll.u32 %v183_v57, 16  ;;  %vm189_vm13 = vc.u32 %v181_v63, %v185_v1 }
  0xa1   :  { %v95_v6 = vmul.u32 140, %v94_v61  ;;  %v165_v9 = vadd.s32 %v164_v4, %v154_v56  ;;  %v190_v10 = vsel %vm189_vm13, 1, %v399_v0  ;;  %v191_v11 = vadd.s32 %v185_v1, %v181_v63 }
  0xa2   :  { %v127_v8 = vmul.u32 140, %v126_v2  ;;  %v192_v13 = vadd.s32 %v190_v10, %v184_v5  ;;  %v168_v17 = vsel %vm167_vm12, 1, %v399_v0  ;;  %v186_v40 = vshrl.u32 %v182_v52, 16 }
  0xa3   :  { %v96_v12 = vsub.s32 %v481_v42, %v95_v6  ;;  %v166_v15 = vadd.s32 %v165_v9, %v156_v3  ;;  %vm193_vm14 = vc.u32 %v191_v11, %v187_v7  ;;  %v195_v21 = vadd.s32 %v191_v11, %v187_v7 }
  0xa4   :  { %v128_v14 = vsub.s32 %v486_v43, %v127_v8  ;;  %v194_v18 = vsel %vm193_vm14, 1, %v399_v0  ;;  %v188_v46 = vshrl.u32 %v183_v57, 16  ;;  %vm231_vm12 = vcmp.ge.s32.totalorder %v446_v31, 0 }
  0xa5   :  { %v97_v16 = vsub.s32 0, %v96_v12  ;;  %v169_v20 = vadd.s32 %v168_v17, %v166_v15  ;;  %v196_v22 = vadd.s32 %v194_v18, %v192_v13  ;;  %vm199_vm9 = vc.u32 %v195_v21, 3926827242  ;;  %v305_v18 = vld [vmem:[%s644_s2] ss:$4 sm:$0x3] }
  0xa6   :  { %v129_v19 = vsub.s32 0, %v128_v14  ;;  %v200_v53 = vsel %vm199_vm9, 1, %v399_v0  ;;  %vm232_vm13 = vcmp.ge.s32.totalorder %v450_v32, 0  ;;  %v401_v8 = vmov 0.0  }
  0xa7   :  { %v98_v39 = vsel %vm67_vm0, %v97_v16, %v96_v12  ;;  %v170_v44 = vshrl.u32 %v169_v20, 7  ;;  %v197_v47 = vadd.s32 %v196_v22, %v186_v40  ;;  %v378_v40 = vld [vmem:[%s644_s2 + $0x1] ss:$4 sm:$0x3] }
  0xa8   :  { %v130_v42 = vsel %vm99_vm1, %v129_v19, %v128_v14  ;;  %vm131_vm15 = vcmp.ne.s32.totalorder %v98_v39, 0  ;;  %vm133_vm4 = vcmp.lt.s32.totalorder %v98_v39, 0  ;;  %v137_v43 = vadd.s32 140, %v98_v39 }
  0xa9   :  { %vm132_vm5 = vcmp.ne.s32.totalorder %v130_v42, 0  ;;  %vm134_vm6 = vcmp.lt.s32.totalorder %v130_v42, 0  ;;  %vm135_vm7 = vmand %vm133_vm4, %vm131_vm15  ;;  %v138_v41 = vadd.s32 140, %v130_v42  ;;  %v171_v35 = vmul.u32 140, %v170_v44 }
  0xaa   :  { %vm136_vm8 = vmand %vm134_vm6, %vm132_vm5  ;;  %v139_v45 = vsel %vm135_vm7, %v137_v43, %v98_v39  ;;  %v198_v50 = vadd.s32 %v197_v47, %v188_v46  ;;  %vm235_vm5 = vcmp.lt.s32.totalorder %v446_v31, 23  ;;  %vm236_vm6 = vcmp.lt.s32.totalorder %v450_v32, 23  ;;  %v379_v46 = vld [vmem:[%s644_s2 + $0x9] ss:$4 sm:$0x3] }
  0xab   :  { %v140_v48 = vsel %vm136_vm8, %v138_v41, %v130_v42  ;;  %vm217_vm0 = vcmp.eq.s32.totalorder %v139_v45, 139  ;;  %v219_v49 = vadd.s32 1, %v139_v45  ;;  %vm229_vm1 = vcmp.ge.s32.totalorder %v139_v45, 84  ;;  %v382_v47 = vld [vmem:[%s644_s2 + $0x2] ss:$4 sm:$0x3] }
  0xac   :  { %vm218_vm10 = vcmp.eq.s32.totalorder %v140_v48, 139  ;;  %v220_v36 = vadd.s32 1, %v140_v48  ;;  %v172_v52 = vsub.s32 %v497_v51, %v171_v35  ;;  %vm230_vm11 = vcmp.ge.s32.totalorder %v140_v48, 84  ;;  %vm233_vm14 = vmand %vm229_vm1, %vm231_vm12 }
  0xad   :  { %v221_v56 = vsel %vm217_vm0, 0, %v219_v49  ;;  %v201_v54 = vadd.s32 %v200_v53, %v198_v50  ;;  %vm234_vm4 = vmand %vm230_vm11, %vm232_vm13  ;;  %vm245_vm8 = vcmp.ge.s32.totalorder %v446_v31, 4294967295  ;;  %v57_v31 = vsub.f32 %v432_v23, %v53_v27  ;;  %v383_v49 = vld [vmem:[%s644_s2 + $0xa] ss:$4 sm:$0x3] }
  0xae   :  { %v222_v58 = vsel %vm218_vm10, 0, %v220_v36  ;;  %v173_v57 = vsub.s32 0, %v172_v52  ;;  %vm243_vm15 = vcmp.ge.s32.totalorder %v221_v56, 84  ;;  %vm534_vm10 = vmand %vm233_vm14, %vm235_vm5  ;;  %v59_v23 = vsub.f32 %v436_v25, %v55_v29 }
  0xaf   :  { %v202_v59 = vshrl.u32 %v201_v54, 7  ;;  %vm244_vm7 = vcmp.ge.s32.totalorder %v222_v58, 84  ;;  %vm247_vm1 = vmand %vm243_vm15, %vm245_vm8  ;;  %v60_v27 = vsub.f32 %v438_v26, %v56_v30  ;;  %v368_v29 = vsel %vm534_vm10, 1.0, %v401_v8 }
  0xb0   :  { %v174_v51 = vsel %vm143_vm2, %v173_v57, %v172_v52  ;;  %vm538_vm12 = vmand %vm234_vm4, %vm236_vm6  ;;  %vm246_vm2 = vcmp.ge.s32.totalorder %v450_v32, 4294967295  ;;  %vm259_vm4 = vcmp.ge.s32.totalorder %v454_v33, 0  ;;  %vm250_vm6 = vcmp.lt.s32.totalorder %v450_v32, 22 }
  0xb1   :  { %v203_v0 = vmul.u32 140, %v202_v59  ;;  %vm207_vm9 = vcmp.ne.s32.totalorder %v174_v51, 0  ;;  %vm209_vm0 = vcmp.lt.s32.totalorder %v174_v51, 0  ;;  %v213_v60 = vadd.s32 140, %v174_v51  ;;  %vm248_vm13 = vmand %vm244_vm7, %vm246_vm2 }
  0xb2   :  { %vm211_vm11 = vmand %vm209_vm0, %vm207_vm9  ;;  %vm263_vm7 = vcmp.lt.s32.totalorder %v454_v33, 23  ;;  %v58_v32 = vsub.f32 %v434_v24, %v54_v28  ;;  %v285_v30 = vsub.f32 1.0, %v57_v31  ;;  %v369_v10 = vsel %vm538_vm12, 1.0, %v401_v8 }
  0xb3   :  { %v204_v37 = vsub.s32 %v502_v55, %v203_v0  ;;  %v215_v63 = vsel %vm211_vm11, %v213_v60, %v174_v51  ;;  %vm545_vm14 = vmand %vm247_vm1, %vm249_vm3  ;;  %vm655_vm3 = vcmp.lt.s32.totalorder %v470_v38, 0  ;;  %vm273_vm11 = vcmp.ge.s32.totalorder %v454_v33, 4294967295 }
  0xb4   :  { %vm223_vm5 = vcmp.eq.s32.totalorder %v215_v63, 139  ;;  %v225_v1 = vadd.s32 1, %v215_v63  ;;  %vm257_vm15 = vcmp.ge.s32.totalorder %v215_v63, 84  ;;  %vm551_vm9 = vmand %vm248_vm13, %vm250_vm6  ;;  %vm277_vm6 = vcmp.lt.s32.totalorder %v454_v33, 22 }
  0xb5   :  { %v205_v3 = vsub.s32 0, %v204_v37  ;;  %vm261_vm8 = vmand %vm257_vm15, %vm259_vm4  ;;  %vm260_vm4 = vcmp.ge.s32.totalorder %v458_v34, 0  ;;  %v370_v24 = vsel %vm545_vm14, 1.0, %v401_v8  ;;  %v371_v28 = vsel %vm551_vm9, 1.0, %v401_v8 }
  0xb6   :  { %v227_v4 = vsel %vm223_vm5, 0, %v225_v1  ;;  %vm561_vm0 = vmand %vm261_vm8, %vm263_vm7  ;;  %vm264_vm8 = vcmp.lt.s32.totalorder %v458_v34, 23  ;;  %v286_v33 = vsub.f32 1.0, %v58_v32  ;;  %v289_v12 = vmul.f32 %v370_v24, %v57_v31 }
  0xb7   :  { %v206_v5 = vsel %vm655_vm3, %v205_v3, %v204_v37  ;;  %vm271_vm1 = vcmp.ge.s32.totalorder %v227_v4, 84  ;;  %v372_v11 = vsel %vm561_vm0, 1.0, %v401_v8  ;;  %v290_v13 = vmul.f32 %v371_v28, %v58_v32 }
  0xb8   :  { %vm208_vm2 = vcmp.ne.s32.totalorder %v206_v5, 0  ;;  %vm210_vm13 = vcmp.lt.s32.totalorder %v206_v5, 0  ;;  %v214_v7 = vadd.s32 140, %v206_v5  ;;  %vm275_vm5 = vmand %vm271_vm1, %vm273_vm11  ;;  %v293_v14 = vsub.f32 1.0, %v59_v23 }
  0xb9   :  { %vm212_vm15 = vmand %vm210_vm13, %vm208_vm2  ;;  %vm274_vm2 = vcmp.ge.s32.totalorder %v458_v34, 4294967295  ;;  %vm278_vm13 = vcmp.lt.s32.totalorder %v458_v34, 22  ;;  %v287_v17 = vmul.f32 %v368_v29, %v285_v30  ;;  %v288_v19 = vmul.f32 %v369_v10, %v286_v33  ;;  %v376_v34 = vld [vmem:[%s644_s2 + $0x8] ss:$4 sm:$0x3] }
  0xba   :  { %v216_v38 = vsel %vm212_vm15, %v214_v7, %v206_v5  ;;  %vm279_vm7 = vmand %vm275_vm5, %vm277_vm6  ;;  %v294_v20 = vsub.f32 1.0, %v60_v27  ;;  %v295_v21 = vmul.f32 %v372_v11, %v293_v14  ;;  %v308_v45 = vmul.f32 4.943154, %v305_v18 }
  0xbb   :  { %vm224_vm3 = vcmp.eq.s32.totalorder %v216_v38, 139  ;;  %v226_v25 = vadd.s32 1, %v216_v38  ;;  %vm258_vm1 = vcmp.ge.s32.totalorder %v216_v38, 84  ;;  %v374_v26 = vsel %vm279_vm7, 1.0, %v401_v8 }
  0xbc   :  { %vm262_vm11 = vmand %vm258_vm1, %vm260_vm4  ;;  %v297_v15 = vmul.f32 %v374_v26, %v59_v23  ;;  %v291_v39 = vadd.f32 %v289_v12, %v287_v17  ;;  %v292_v42 = vadd.f32 %v290_v13, %v288_v19  ;;  %v335_v35 = vmul.f32 5.015045, %v378_v40 }
  0xbd   :  { %v228_v9 = vsel %vm224_vm3, 0, %v226_v25  ;;  %vm266_vm14 = vmand %vm262_vm11, %vm264_vm8  ;;  %v309_v52 = vmul.f32 4.943154, %v376_v34  ;;  %v336_v53 = vmul.f32 5.015045, %v379_v46  ;;  %v324_v54 = vlaneseq }
  0xbe   :  { %vm272_vm9 = vcmp.ge.s32.totalorder %v228_v9, 84  ;;  %v373_v16 = vsel %vm266_vm14, 1.0, %v401_v8  ;;  %v299_v44 = vadd.f32 %v297_v15, %v295_v21  ;;  %v349_v56 = vmul.f32 4.9751244, %v382_v47 }
  0xbf   :  { %vm276_vm10 = vmand %vm272_vm9, %vm274_vm2  ;;  %v296_v43 = vmul.f32 %v373_v16, %v294_v20  ;;  %v350_v58 = vmul.f32 4.9751244, %v383_v49  ;;  %v310_v59 = vadd.f32 -2.4290657, %v308_v45  ;;  %vm315_vm12 = vcmask 1040384  }
  0xc0   :  { %vm280_vm5 = vmand %vm276_vm10, %vm278_vm13  ;;  %v301_v50 = vmul.f32 %v299_v44, %v291_v39  ;;  %vm317_vm0 = vcmask 1041409   ;;  %v337_v51 = vadd.f32 -2.4182549, %v335_v35  ;;  %v311_v61 = vadd.f32 -2.4290657, %v309_v52 }
  0xc1   :  { %v375_v22 = vsel %vm280_vm5, 1.0, %v401_v8  ;;  %v338_v62 = vadd.f32 -2.4182549, %v336_v53  ;;  %v351_v37 = vadd.f32 -2.221393, %v349_v56  ;;  %vm608_vm15 = vcmp.lt.s32.totalorder %v324_v54, 256 }
  0xc2   :  { %v298_v41 = vmul.f32 %v375_v22, %v60_v27  ;;  %v303_v0 = vsub.f32 1.0, %v301_v50  ;;  %v352_v1 = vadd.f32 -2.221393, %v350_v58 }
  0xc4   :  { %v300_v48 = vadd.f32 %v298_v41, %v296_v43 }
  0xc6   :  { %v302_v36 = vmul.f32 %v300_v48, %v292_v42 }
  0xc8   :  { %v304_v57 = vsub.f32 1.0, %v302_v36 }
  0xca   :  { %v314_v60 = vrot.slane %v304_v57, 7 }
  0xcc   :  { %v316_v2 = vsel %vm315_vm12, %v303_v0, %v314_v60  ;;  %v318_v3 = vsel %vm317_vm0, %v303_v0, %v314_v60 }
  0xcd   :  { %v319_v4 = vrot.slane %v318_v3, 1  ;;  %v322_v55 = vmul.f32 %v316_v2, %v310_v59  ;;  %v339_v31 = vmul.f32 %v337_v51, %v316_v2  ;;  %v353_v32 = vmul.f32 %v351_v37, %v316_v2 }
  0xcf   :  { %v323_v5 = vmul.f32 %v319_v4, %v311_v61  ;;  %328 = vst.msk [vmem:[%s645_s3] ss:$4 sm:$0x3] %vm608_vm15, %v322_v55  ;;  %v340_v6 = vmul.f32 %v338_v62, %v319_v4  ;;  %v354_v7 = vmul.f32 %v352_v1, %v319_v4 }
  0xd0   :  { %380 = vst.msk [vmem:[%s645_s3 + $0x1] ss:$4 sm:$0x3] %vm608_vm15, %v339_v31 }
  0xd1   :  { %377 = vst.msk [vmem:[%s645_s3 + $0x8] ss:$4 sm:$0x3] %vm608_vm15, %v323_v5 }
  0xd2   :  { %381 = vst.msk [vmem:[%s645_s3 + $0x9] ss:$4 sm:$0x3] %vm608_vm15, %v340_v6 }
  0xd3   :  { %384 = vst.msk [vmem:[%s645_s3 + $0x2] ss:$4 sm:$0x3] %vm608_vm15, %v353_v32 }
  0xd4   :  { %385 = vst.msk [vmem:[%s645_s3 + $0xa] ss:$4 sm:$0x3] %vm608_vm15, %v354_v7 }

</bundles_post_ra>
